<compile_context>
chip_gen: v6e
topology: v6e:2x2x1
jax: 0.10.0
libtpu: 0.0.40
codegen_flags: <defaults>
</compile_context>

<pallas_src>
import math

import jax
import jax.numpy as jnp
from jax.experimental import pallas as pl
from jax.experimental.pallas import tpu as pltpu


def _round_up(x: int, m: int) -> int:
    return ((x + m - 1) // m) * m


def _cdiv(x: int, m: int) -> int:
    return (x + m - 1) // m


# --------------------------------------------------------------------------- #
# Kernels
# --------------------------------------------------------------------------- #
def _ffn_kernel_resident(x_ref, w1_ref, b1_ref, w2_ref, b2_ref, o_ref):
    """Single hidden step: full d_ff weights resident in VMEM, no accumulator."""
    h = jnp.dot(x_ref[...], w1_ref[...], preferred_element_type=jnp.float32)
    h = jnp.maximum(h + b1_ref[...], 0.0)
    out = jnp.dot(h.astype(w2_ref.dtype), w2_ref[...],
                  preferred_element_type=jnp.float32)
    o_ref[...] = (out + b2_ref[...]).astype(o_ref.dtype)


def _ffn_kernel_tiled(x_ref, w1_ref, b1_ref, w2_ref, b2_ref, o_ref, acc_ref):
    """Hidden-dim (d_ff) reduction: accumulate fc2 partials in f32 VMEM."""
    j = pl.program_id(1)

    @pl.when(j == 0)
    def _():
        acc_ref[...] = jnp.zeros_like(acc_ref)

    # fc1 partial for this hidden slice (+ its own b1 columns, exact), ReLU.
    h = jnp.dot(x_ref[...], w1_ref[...], preferred_element_type=jnp.float32)
    h = jnp.maximum(h + b1_ref[...], 0.0)

    # fc2 partial: contract this hidden slice against matching w2 rows.
    acc_ref[...] += jnp.dot(h.astype(w2_ref.dtype), w2_ref[...],
                            preferred_element_type=jnp.float32)

    @pl.when(j == pl.num_programs(1) - 1)
    def _():
        # fc2 bias added exactly once, in the finalize branch.
        o_ref[...] = (acc_ref[...] + b2_ref[...]).astype(o_ref.dtype)


# --------------------------------------------------------------------------- #
# Wrapper
# --------------------------------------------------------------------------- #
def position_wise_feed_forward(x, w1, b1, w2, b2, *,
                               block_m: int = 512,
                               block_f: int = 512,
                               compute_dtype=jnp.bfloat16,
                               vmem_budget_bytes: int | None = None):
    """x: [..., d_model].  w1: [d_model, d_ff], b1: [1, d_ff],
    w2: [d_ff, d_model], b2: [1, d_model]  (weights stored [in, out]).
    Matmuls run in `compute_dtype` with f32 accumulation; biases stay f32."""
    orig_shape = x.shape
    d_model = orig_shape[-1]
    d_ff = w1.shape[1]
    assert w1.shape == (d_model, d_ff)
    assert b1.shape == (1, d_ff)
    assert w2.shape == (d_ff, d_model)
    assert b2.shape == (1, d_model)

    out_dtype = x.dtype
    cbytes = jnp.dtype(compute_dtype).itemsize
    obytes = jnp.dtype(out_dtype).itemsize
    sub = 8 if cbytes >= 4 else 16          # sub-32-bit dtypes pack 16 sublanes

    x2 = x.reshape(-1, d_model)
    m = x2.shape[0]

    # ---- Generation-aware VMEM budget -------------------------------------
    try:
        vmem_cap = pltpu.get_tpu_info().vmem_capacity_bytes
    except Exception:
        vmem_cap = 64 * 1024 * 1024         # conservative (v7x-sized) fallback
    vmem_limit = int(0.75 * vmem_cap)       # explicit compiler scoped limit
    budget = vmem_limit if vmem_budget_bytes is None else min(
        int(vmem_budget_bytes), vmem_limit)

    # ---- VMEM usage models (double-buffered blocks) ------------------------
    def resident_vmem(tm_):
        return (2 * tm_ * d_model * cbytes          # x block
                + 2 * d_model * d_ff * cbytes       # w1 (resident)
                + 2 * d_ff * 4                      # b1 (f32)
                + 2 * d_ff * d_model * cbytes       # w2 (resident)
                + 2 * d_model * 4                   # b2 (f32)
                + 2 * tm_ * d_model * obytes)       # out block

    def tiled_vmem(tm_, tf_):
        return (2 * tm_ * d_model * cbytes
                + 2 * d_model * tf_ * cbytes
                + 2 * tf_ * 4
                + 2 * tf_ * d_model * cbytes
                + 2 * d_model * 4
                + 2 * tm_ * d_model * obytes
                + tm_ * d_model * 4)                # f32 accumulator

    # ---- Row tiling ---------------------------------------------------------
    tm = _round_up(min(block_m, _round_up(m, sub)), sub)
    # Give v7x's 2 TensorCores at least 2 row tiles when there is enough work.
    if _cdiv(m, tm) < 2 and m >= 256:
        tm = _round_up(_cdiv(m, 2), sub)
    # Shrink tm if even a minimal hidden tile can't fit the budget.
    while tm > sub and tiled_vmem(tm, 128) > budget:
        tm = max(sub, _round_up(tm // 2, sub))
    mp = _round_up(m, tm)

    # ---- Hidden tiling: weight-resident fast path when it fits -------------
    weights_resident = resident_vmem(tm) <= budget
    if weights_resident:
        tf = fp = d_ff
    else:
        tf = max(128, (min(block_f, _round_up(d_ff, 128)) // 128) * 128)
        while tf > 128 and tiled_vmem(tm, tf) > budget:
            tf -= 128
        if d_ff % tf != 0:                  # prefer a divisor over padding
            for cand in range(tf, 127, -128):
                if d_ff % cand == 0:
                    tf = cand
                    break
        fp = _round_up(d_ff, tf)

    # ---- Padding fallbacks (zero d_ff padding is exact: relu(0)=0, zero w2) -
    if fp != d_ff:
        w1 = jnp.pad(w1, ((0, 0), (0, fp - d_ff)))
        b1 = jnp.pad(b1, ((0, 0), (0, fp - d_ff)))
        w2 = jnp.pad(w2, ((0, fp - d_ff), (0, 0)))

    # Cast matmul operands to the MXU compute dtype; keep biases f32.
    x2 = x2.astype(compute_dtype)
    w1c = w1.astype(compute_dtype)
    w2c = w2.astype(compute_dtype)
    b1f = b1.astype(jnp.float32)
    b2f = b2.astype(jnp.float32)

    if mp != m:
        # TODO(synk): a masked last row tile would avoid this extra HBM copy;
        # callers should prefer M % tm == 0.
        x2 = jnp.pad(x2, ((0, mp - m), (0, 0)))

    n_row = mp // tm
    weight_passes = 1 if weights_resident else n_row
    cost = pl.CostEstimate(
        flops=4 * mp * d_model * fp,
        transcendentals=0,
        bytes_accessed=(mp * d_model * (cbytes + obytes)
                        + weight_passes * 2 * d_model * fp * cbytes
                        + fp * 4 + d_model * 4))

    if weights_resident:
        grid_spec = pltpu.PrefetchScalarGridSpec(
            num_scalar_prefetch=0,
            grid=(n_row,),
            in_specs=[
                pl.BlockSpec((tm, d_model), lambda i: (i, 0)),   # x rows
                pl.BlockSpec((d_model, fp), lambda i: (0, 0)),   # w1 (resident)
                pl.BlockSpec((1, fp),       lambda i: (0, 0)),   # b1
                pl.BlockSpec((fp, d_model), lambda i: (0, 0)),   # w2 (resident)
                pl.BlockSpec((1, d_model),  lambda i: (0, 0)),   # b2
            ],
            out_specs=pl.BlockSpec((tm, d_model), lambda i: (i, 0)),
            scratch_shapes=[],
        )
        kernel = _ffn_kernel_resident
        dim_sem = ("parallel",)
    else:
        grid_spec = pltpu.PrefetchScalarGridSpec(
            num_scalar_prefetch=0,
            grid=(n_row, fp // tf),
            in_specs=[
                pl.BlockSpec((tm, d_model), lambda i, j: (i, 0)),  # x rows
                pl.BlockSpec((d_model, tf), lambda i, j: (0, j)),  # w1 slice
                pl.BlockSpec((1, tf),       lambda i, j: (0, j)),  # b1 slice
                pl.BlockSpec((tf, d_model), lambda i, j: (j, 0)),  # w2 slice
                pl.BlockSpec((1, d_model),  lambda i, j: (0, 0)),  # b2
            ],
            out_specs=pl.BlockSpec((tm, d_model), lambda i, j: (i, 0)),
            scratch_shapes=[pltpu.VMEM((tm, d_model), jnp.float32)],
        )
        kernel = _ffn_kernel_tiled
        dim_sem = ("parallel", "arbitrary")

    out = pl.pallas_call(
        kernel,
        out_shape=jax.ShapeDtypeStruct((mp, d_model), out_dtype),
        grid_spec=grid_spec,
        compiler_params=pltpu.CompilerParams(
            dimension_semantics=dim_sem,
            vmem_limit_bytes=vmem_limit),
        cost_estimate=cost,
    )(x2, w1c, b1f, w2c, b2f)

    if mp != m:
        out = out[:m]
    return out.reshape(orig_shape)


# --------------------------------------------------------------------------- #
# Parameters / references
# --------------------------------------------------------------------------- #
def init_params(key, d_model, d_ff):
    """Deterministic params matching torch nn.Linear init
    (uniform(-1/sqrt(fan_in), 1/sqrt(fan_in))); weights stored [in, out]."""
    k1, k2, k3, k4 = jax.random.split(key, 4)
    s1 = 1.0 / math.sqrt(d_model)
    s2 = 1.0 / math.sqrt(d_ff)
    w1 = jax.random.uniform(k1, (d_model, d_ff), jnp.float32, -s1, s1)
    b1 = jax.random.uniform(k2, (1, d_ff), jnp.float32, -s1, s1)
    w2 = jax.random.uniform(k3, (d_ff, d_model), jnp.float32, -s2, s2)
    b2 = jax.random.uniform(k4, (1, d_model), jnp.float32, -s2, s2)
    return w1, b1, w2, b2


def reference_ffn(x, w1, b1, w2, b2):
    """Pure-JAX f32 reference mirroring the torch forward exactly."""
    h = jnp.maximum(
        jnp.dot(x, w1, precision=jax.lax.Precision.HIGHEST) + b1, 0.0)
    return jnp.dot(h, w2, precision=jax.lax.Precision.HIGHEST) + b2


def reference_ffn_bf16(x, w1, b1, w2, b2):
    """Reference emulating the kernel's bf16-matmul / f32-accumulate path."""
    xb, w1b, w2b = (a.astype(jnp.bfloat16) for a in (x, w1, w2))
    h = jnp.dot(xb, w1b, preferred_element_type=jnp.float32) + b1
    h = jnp.maximum(h, 0.0).astype(jnp.bfloat16)
    return jnp.dot(h, w2b, preferred_element_type=jnp.float32) + b2


# --------------------------------------------------------------------------- #
# Self-test
# --------------------------------------------------------------------------- #
if __name__ == "__main__":
    # small shapes: batch=2, seq=8, d_model=128 (lane-dense), d_ff=256
    B, S, D_MODEL, D_FF = 2, 8, 128, 256

    key = jax.random.PRNGKey(0)
    kx, kp = jax.random.split(key, 2)
    x = jax.random.normal(kx, (B, S, D_MODEL), jnp.float32)
    w1, b1, w2, b2 = init_params(kp, D_MODEL, D_FF)

    ref_f32 = reference_ffn(x, w1, b1, w2, b2)

    # 1) f32 compute path -> weight-resident single-step kernel, exact check.
    out_f32 = position_wise_feed_forward(x, w1, b1, w2, b2,
                                         compute_dtype=jnp.float32)
    out_f32 = jax.block_until_ready(out_f32)
    assert out_f32.shape == (B, S, D_MODEL)
    assert jnp.allclose(out_f32, ref_f32, atol=2e-3, rtol=2e-3), \
        "f32 resident path mismatch vs JAX reference"

    # 2) default bf16 compute path (native MXU dtype, f32 accumulation).
    out_bf16 = position_wise_feed_forward(x, w1, b1, w2, b2)
    out_bf16 = jax.block_until_ready(out_bf16)
    ref_b16 = reference_ffn_bf16(x, w1, b1, w2, b2)
    assert jnp.allclose(out_bf16, ref_b16, atol=2e-2, rtol=2e-2), \
        "bf16 resident path mismatch vs bf16 JAX reference"

    # 3) force the hidden-dim reduction (tiled) kernel with a tiny budget,
    #    exercising the f32 accumulator init/finalize path on a (2, 2) grid.
    out_tiled = position_wise_feed_forward(
        x, w1, b1, w2, b2, compute_dtype=jnp.float32,
        block_f=128, vmem_budget_bytes=220 * 1024)
    out_tiled = jax.block_until_ready(out_tiled)
    assert jnp.allclose(out_tiled, ref_f32, atol=2e-3, rtol=2e-3), \
        "tiled reduction path mismatch vs JAX reference"

    print("KERNEL_OK")
</pallas_src>

<mosaic_0001>
module attributes {stable_mosaic.version = 11 : i64} {
  func.func @_ffn_kernel_resident(%arg0: i32, %arg1: memref<16x128xf32, #tpu.memory_space<vmem>>, %arg2: memref<128x256xf32, #tpu.memory_space<vmem>>, %arg3: memref<1x256xf32, #tpu.memory_space<vmem>>, %arg4: memref<256x128xf32, #tpu.memory_space<vmem>>, %arg5: memref<1x128xf32, #tpu.memory_space<vmem>>, %arg6: memref<16x128xf32, #tpu.memory_space<vmem>>) attributes {dimension_semantics = [#tpu.dimension_semantics<parallel>], iteration_bounds = array<i64: 1>, scalar_prefetch = 0 : i64, scratch_operands = 0 : i64, tpu.core_type = #tpu.core_type<tc>, window_params = [{transform_indices = @transform_0, window_bounds = array<i64: 16, 128>}, {pipeline_mode = #tpu.pipeline_mode<synchronous>, transform_indices = @transform_1, window_bounds = array<i64: 128, 256>}, {pipeline_mode = #tpu.pipeline_mode<synchronous>, transform_indices = @transform_2, window_bounds = array<i64: 1, 256>}, {pipeline_mode = #tpu.pipeline_mode<synchronous>, transform_indices = @transform_3, window_bounds = array<i64: 256, 128>}, {pipeline_mode = #tpu.pipeline_mode<synchronous>, transform_indices = @transform_4, window_bounds = array<i64: 1, 128>}, {transform_indices = @transform_5, window_bounds = array<i64: 16, 128>}]} {
    %c0 = arith.constant 0 : index
    %c0_0 = arith.constant 0 : index
    %0 = vector.load %arg1[%c0, %c0_0] : memref<16x128xf32, #tpu.memory_space<vmem>>, vector<16x128xf32>
    %c0_1 = arith.constant 0 : index
    %c0_2 = arith.constant 0 : index
    %1 = vector.load %arg2[%c0_1, %c0_2] : memref<128x256xf32, #tpu.memory_space<vmem>>, vector<128x256xf32>
    %cst = arith.constant dense<0.000000e+00> : vector<16x256xf32>
    %2 = tpu.matmul %0, %1, %cst {dimension_numbers = #tpu.dot_dimension_numbers<[1], [0], [0], [1], [0, 0, 1, 1], [], []>} : vector<16x128xf32>, vector<128x256xf32>, vector<16x256xf32> -> vector<16x256xf32>
    %c0_3 = arith.constant 0 : index
    %c0_4 = arith.constant 0 : index
    %3 = vector.load %arg3[%c0_3, %c0_4] : memref<1x256xf32, #tpu.memory_space<vmem>>, vector<1x256xf32>
    %4 = vector.broadcast %3 : vector<1x256xf32> to vector<16x256xf32>
    %5 = arith.addf %2, %4 : vector<16x256xf32>
    %cst_5 = arith.constant 0.000000e+00 : f32
    %6 = vector.broadcast %cst_5 : f32 to vector<16x256xf32>
    %7 = arith.maximumf %5, %6 : vector<16x256xf32>
    %c0_6 = arith.constant 0 : index
    %c0_7 = arith.constant 0 : index
    %8 = vector.load %arg4[%c0_6, %c0_7] : memref<256x128xf32, #tpu.memory_space<vmem>>, vector<256x128xf32>
    %cst_8 = arith.constant dense<0.000000e+00> : vector<16x128xf32>
    %9 = tpu.matmul %7, %8, %cst_8 {dimension_numbers = #tpu.dot_dimension_numbers<[1], [0], [0], [1], [0, 0, 1, 1], [], []>} : vector<16x256xf32>, vector<256x128xf32>, vector<16x128xf32> -> vector<16x128xf32>
    %c0_9 = arith.constant 0 : index
    %c0_10 = arith.constant 0 : index
    %10 = vector.load %arg5[%c0_9, %c0_10] : memref<1x128xf32, #tpu.memory_space<vmem>>, vector<1x128xf32>
    %11 = vector.broadcast %10 : vector<1x128xf32> to vector<16x128xf32>
    %12 = arith.addf %9, %11 : vector<16x128xf32>
    %c0_11 = arith.constant 0 : index
    %c0_12 = arith.constant 0 : index
    %13 = vector.load %arg6[%c0_11, %c0_12] : memref<16x128xf32, #tpu.memory_space<vmem>>, vector<16x128xf32>
    tpu.vector_store %arg6[%c0_11, %c0_12], %12 {strides = array<i32>} : memref<16x128xf32, #tpu.memory_space<vmem>>, vector<16x128xf32>,
    return
  }
  func.func @transform_0(%arg0: i32) -> (i32, i32) {
    %c0_i32 = arith.constant 0 : i32
    %c0_i32_0 = arith.constant 0 : i32
    return %arg0, %c0_i32 : i32, i32
  }
  func.func @transform_1(%arg0: i32) -> (i32, i32) {
    %c0_i32 = arith.constant 0 : i32
    %c0_i32_0 = arith.constant 0 : i32
    %c0_i32_1 = arith.constant 0 : i32
    return %c0_i32, %c0_i32_0 : i32, i32
  }
  func.func @transform_2(%arg0: i32) -> (i32, i32) {
    %c0_i32 = arith.constant 0 : i32
    %c0_i32_0 = arith.constant 0 : i32
    %c0_i32_1 = arith.constant 0 : i32
    return %c0_i32, %c0_i32_0 : i32, i32
  }
  func.func @transform_3(%arg0: i32) -> (i32, i32) {
    %c0_i32 = arith.constant 0 : i32
    %c0_i32_0 = arith.constant 0 : i32
    %c0_i32_1 = arith.constant 0 : i32
    return %c0_i32, %c0_i32_0 : i32, i32
  }
  func.func @transform_4(%arg0: i32) -> (i32, i32) {
    %c0_i32 = arith.constant 0 : i32
    %c0_i32_0 = arith.constant 0 : i32
    %c0_i32_1 = arith.constant 0 : i32
    return %c0_i32, %c0_i32_0 : i32, i32
  }
  func.func @transform_5(%arg0: i32) -> (i32, i32) {
    %c0_i32 = arith.constant 0 : i32
    %c0_i32_0 = arith.constant 0 : i32
    return %arg0, %c0_i32 : i32, i32
  }
}

</mosaic_0001>

<bundles_post_ra>
// kernel: tpu_custom_call.1
= control target key start
LH: loop header
LB: loop body
LE: loop exit
PB: predicated region body
PF: predicated region fallthrough
CT: control target
= control target key end

     0   :  { %10 = vsyncpa [#allocation3], 0  ;;  %s525_s0 = inlined_call_operand.hbm [shape: f32[16,128], index: 0, kind: input, shape index: {}]   ;;  %s526_s1 = inlined_call_operand.hbm [shape: f32[128,256], index: 1, kind: input, shape index: {}]   ;;  %s527_s2 = inlined_call_operand.vmem [shape: f32[1,256], index: 2, kind: input, shape index: {}]   ;;  %s528_s3 = inlined_call_operand.hbm [shape: f32[256,128], index: 3, kind: input, shape index: {}]   ;;  %s529_s4 = inlined_call_operand.vmem [shape: f32[1,128], index: 4, kind: input, shape index: {}]   ;;  %s530_s5 = inlined_call_operand.hbm [shape: f32[16,128], index: 5, kind: output, shape index: {}]  }
   0x1   :  { %11 = vsyncpa [#allocation6], 0 }
   0x2   :  { %12 = vsyncpa [#allocation4], 0  ;;  %s457_s18 = smov [#allocation5]  }
   0x3   :  { %s30_s19 = sshll.u32 %s457_s18, 4  ;;  %s31_s19 = int_to_ptr.vmem [resolvable:$true] %s30_s19 }
   0x4   :  { %s379_s20 = scalar_lea.vmem %s31_s19, 4096  ;;  %p384_p1 = scmp.lt.s32.totalorder %s31_s19, %s31_s19 }
   0x5   :  { %p380_p0 = scmp.ne.s32.totalorder %s31_s19, %s379_s20  ;;  %p385_p2 = scmp.lt.s32.totalorder %s379_s20, %s379_s20 }
   0x7   :  { %p386_p3 = por %p385_p2, %p384_p1 }
   0x9   :  { %p387_p4 = pnand %p386_p3, %p380_p0 }
   0xb   :  { %390 = shalt.err (!%p387_p4)
}
   0xc   :  { %s458_s21 = smov 256   ;;  %s459_s22 = smov 16  }
   0xd   :  { %36 = dma.hbm_to_vmem [thread:$0]  %s526_s1, 4096, %s31_s19, [#allocation6], %s458_s21, %s458_s21, %s459_s22  }
   0xe   :  { %s460_s25 = smov [#allocation2]  }
   0xf   :  { %s18_s26 = sshll.u32 %s460_s25, 4  ;;  %s19_s26 = int_to_ptr.vmem [resolvable:$true] %s18_s26 }
  0x10   :  { %s399_s27 = scalar_lea.vmem %s19_s26, 256  ;;  %p404_p6 = scmp.lt.s32.totalorder %s19_s26, %s19_s26 }
  0x11   :  { %p400_p5 = scmp.ne.s32.totalorder %s19_s26, %s399_s27  ;;  %p405_p7 = scmp.lt.s32.totalorder %s399_s27, %s399_s27 }
  0x13   :  { %p406_p8 = por %p405_p7, %p404_p6 }
  0x15   :  { %p407_p9 = pnand %p406_p8, %p400_p5 }
  0x17   :  { %410 = shalt.err (!%p407_p9)
}
  0x18   :  { %s461_s28 = smov 128   ;;  %s462_s29 = smov 8  }
  0x19   :  { %24 = dma.hbm_to_vmem [thread:$0]  %s525_s0, 256, %s19_s26, [#allocation3], %s461_s28, %s461_s28, %s462_s29  }
  0x1a   :  { %s463_s1 = smov [#allocation7]  }
  0x1b   :  { %s44_s7 = sshll.u32 %s463_s1, 4  ;;  %s45_s7 = int_to_ptr.vmem [resolvable:$true] %s44_s7 }
  0x1c   :  { %s419_s8 = scalar_lea.vmem %s45_s7, 4096  ;;  %p424_p11 = scmp.lt.s32.totalorder %s45_s7, %s45_s7 }
  0x1d   :  { %p420_p10 = scmp.ne.s32.totalorder %s45_s7, %s419_s8  ;;  %p425_p12 = scmp.lt.s32.totalorder %s419_s8, %s419_s8 }
  0x1f   :  { %p426_p13 = por %p425_p12, %p424_p11 }
  0x21   :  { %p427_p0 = pnand %p426_p13, %p420_p10 }
  0x23   :  { %430 = shalt.err (!%p427_p0)
}
  0x24   :  { %50 = dma.hbm_to_vmem [thread:$0]  %s528_s3, 4096, %s45_s7, [#allocation6], %s461_s28, %s461_s28, %s462_s29  }
  0x25   :  { %451 = dma.done.wait [#allocation3], 256  }
  0x26   :  { %452 = vsyncadd [#allocation3], 4294967040 }
  0x27   :  { %453 = dma.done.wait [#allocation6], 8192  }
  0x28   :  { %454 = vsyncadd [#allocation6], 4294959104  ;;  %v464_v0 = vmov 0.0   ;;  %v95_v1 = vld [vmem:[#allocation5 + $0xf8] sm:$0xff]  ;;  %v94_v2 = vld [vmem:[#allocation5 + $0xf0] sm:$0xff]  ;;  %s465_s12 = smov [#allocation8]  }
  0x29   :  { %172 = vmatprep.mubr.f32.mxu0 %v464_v0  ;;  %v93_v3 = vld [vmem:[#allocation5 + $0xe8] sm:$0xff]  ;;  %108 = vmatprep.subr.mxu0 %v95_v1  ;;  %v92_v4 = vld [vmem:[#allocation5 + $0xe0] sm:$0xff]  ;;  %v91_v5 = vld [vmem:[#allocation5 + $0xd8] sm:$0xff]  ;;  %s310_s13 = sshll.u32 %s465_s12, 4  ;;  %s311_s13 = int_to_ptr.vmem [resolvable:$true] %s310_s13 }
  0x2a   :  { %109 = vmatpush1.msra.mxu0 %v94_v2  ;;  %v90_v6 = vld [vmem:[#allocation5 + $0xd0] sm:$0xff]  ;;  %v89_v7 = vld [vmem:[#allocation5 + $0xc8] sm:$0xff]  ;;  %v88_v8 = vld [vmem:[#allocation5 + $0xc0] sm:$0xff]  ;;  %s431_s14 = scalar_lea.vmem %s311_s13, 256  ;;  %p436_p2 = scmp.lt.s32.totalorder %s311_s13, %s311_s13 }
  0x2b   :  { %110 = vmatprep.subr.mxu0 %v93_v3  ;;  %v87_v9 = vld [vmem:[#allocation5 + $0xb8] sm:$0xff]  ;;  %v86_v10 = vld [vmem:[#allocation5 + $0xb0] sm:$0xff]  ;;  %v85_v11 = vld [vmem:[#allocation5 + $0xa8] sm:$0xff]  ;;  %p432_p1 = scmp.ne.s32.totalorder %s311_s13, %s431_s14  ;;  %p437_p3 = scmp.lt.s32.totalorder %s431_s14, %s431_s14 }
  0x2c   :  { %111 = vmatpush1.msra.mxu0 %v92_v4  ;;  %v84_v12 = vld [vmem:[#allocation5 + $0xa0] sm:$0xff]  ;;  %v83_v13 = vld [vmem:[#allocation5 + $0x98] sm:$0xff]  ;;  %v82_v14 = vld [vmem:[#allocation5 + $0x90] sm:$0xff] }
  0x2d   :  { %112 = vmatprep.subr.mxu0 %v91_v5  ;;  %v220_v15 = vld [vmem:[#allocation7 + $0xf8] sm:$0xff]  ;;  %v81_v17 = vld [vmem:[#allocation5 + $0x88] sm:$0xff]  ;;  %v219_v18 = vld [vmem:[#allocation7 + $0xf0] sm:$0xff]  ;;  %p438_p4 = por %p437_p3, %p436_p2 }
  0x2e   :  { %113 = vmatpush1.msra.mxu0 %v90_v6  ;;  %v204_v16 = vld [vmem:[#allocation7 + $0x78] sm:$0xff]  ;;  %324 = vmatprep.subr.mxu1 %v220_v15  ;;  %v203_v19 = vld [vmem:[#allocation7 + $0x70] sm:$0xff]  ;;  %v80_v20 = vld [vmem:[#allocation5 + $0x80] sm:$0xff] }
  0x2f   :  { %114 = vmatprep.subr.mxu0 %v89_v7  ;;  %325 = vmatpush3.msra.mxu1 %v204_v16  ;;  %v218_v21 = vld [vmem:[#allocation7 + $0xe8] sm:$0xff]  ;;  %v79_v22 = vld [vmem:[#allocation5 + $0x78] sm:$0xff]  ;;  %v78_v24 = vld [vmem:[#allocation5 + $0x70] sm:$0xff]  ;;  %p439_p5 = pnand %p438_p4, %p432_p1 }
  0x30   :  { %115 = vmatpush1.msra.mxu0 %v88_v8  ;;  %326 = vmatprep.subr.mxu1 %v219_v18  ;;  %v202_v23 = vld [vmem:[#allocation7 + $0x68] sm:$0xff]  ;;  %v217_v25 = vld [vmem:[#allocation7 + $0xe0] sm:$0xff]  ;;  %v216_v29 = vld [vmem:[#allocation7 + $0xd8] sm:$0xff] }
  0x31   :  { %116 = vmatprep.subr.mxu0 %v87_v9  ;;  %327 = vmatpush3.msra.mxu1 %v203_v19  ;;  %v77_v26 = vld [vmem:[#allocation5 + $0x68] sm:$0xff]  ;;  %v201_v27 = vld [vmem:[#allocation7 + $0x60] sm:$0xff]  ;;  %v75_v30 = vld [vmem:[#allocation5 + $0x58] sm:$0xff] }
  0x32   :  { %117 = vmatpush1.msra.mxu0 %v86_v10  ;;  %328 = vmatprep.subr.mxu1 %v218_v21  ;;  %v76_v28 = vld [vmem:[#allocation5 + $0x60] sm:$0xff]  ;;  %v200_v31 = vld [vmem:[#allocation7 + $0x58] sm:$0xff]  ;;  %v74_v32 = vld [vmem:[#allocation5 + $0x50] sm:$0xff] }
  0x33   :  { %118 = vmatprep.subr.mxu0 %v85_v11  ;;  %329 = vmatpush3.msra.mxu1 %v202_v23  ;;  %v215_v33 = vld [vmem:[#allocation7 + $0xd0] sm:$0xff]  ;;  %v73_v34 = vld [vmem:[#allocation5 + $0x48] sm:$0xff]  ;;  %v72_v36 = vld [vmem:[#allocation5 + $0x40] sm:$0xff] }
  0x34   :  { %119 = vmatpush1.msra.mxu0 %v84_v12  ;;  %330 = vmatprep.subr.mxu1 %v217_v25  ;;  %v199_v35 = vld [vmem:[#allocation7 + $0x50] sm:$0xff]  ;;  %v214_v37 = vld [vmem:[#allocation7 + $0xc8] sm:$0xff]  ;;  %v71_v38 = vld [vmem:[#allocation5 + $0x38] sm:$0xff] }
  0x35   :  { %120 = vmatprep.subr.mxu0 %v83_v13  ;;  %331 = vmatpush3.msra.mxu1 %v201_v27  ;;  %v198_v39 = vld [vmem:[#allocation7 + $0x48] sm:$0xff]  ;;  %v70_v40 = vld [vmem:[#allocation5 + $0x30] sm:$0xff]  ;;  %v213_v41 = vld [vmem:[#allocation7 + $0xc0] sm:$0xff] }
  0x36   :  { %121 = vmatpush1.msra.mxu0 %v82_v14  ;;  %332 = vmatprep.subr.mxu1 %v216_v29  ;;  %v69_v42 = vld [vmem:[#allocation5 + $0x28] sm:$0xff]  ;;  %v197_v43 = vld [vmem:[#allocation7 + $0x40] sm:$0xff]  ;;  %v212_v45 = vld [vmem:[#allocation7 + $0xb8] sm:$0xff] }
  0x37   :  { %122 = vmatprep.subr.mxu0 %v81_v17  ;;  %333 = vmatpush3.msra.mxu1 %v200_v31  ;;  %v68_v44 = vld [vmem:[#allocation5 + $0x20] sm:$0xff]  ;;  %v67_v46 = vld [vmem:[#allocation5 + $0x18] sm:$0xff]  ;;  %v66_v48 = vld [vmem:[#allocation5 + $0x10] sm:$0xff] }
  0x38   :  { %123 = vmatpush1.msra.mxu0 %v80_v20  ;;  %334 = vmatprep.subr.mxu1 %v215_v33  ;;  %v196_v47 = vld [vmem:[#allocation7 + $0x38] sm:$0xff]  ;;  %v211_v49 = vld [vmem:[#allocation7 + $0xb0] sm:$0xff]  ;;  %v65_v50 = vld [vmem:[#allocation5 + $0x8] sm:$0xff] }
  0x39   :  { %124 = vmatprep.subr.mxu0 %v79_v22  ;;  %335 = vmatpush3.msra.mxu1 %v199_v35  ;;  %v195_v51 = vld [vmem:[#allocation7 + $0x30] sm:$0xff]  ;;  %v64_v52 = vld [vmem:[#allocation5] sm:$0xff]  ;;  %v210_v53 = vld [vmem:[#allocation7 + $0xa8] sm:$0xff] }
  0x3a   :  { %125 = vmatpush1.msra.mxu0 %v78_v24  ;;  %336 = vmatprep.subr.mxu1 %v214_v37  ;;  %v62_v54 = vld [vmem:[#allocation2] sm:$0xff]  ;;  %v194_v55 = vld [vmem:[#allocation7 + $0x28] sm:$0xff]  ;;  %v209_v56 = vld [vmem:[#allocation7 + $0xa0] sm:$0xff] }
  0x3b   :  { %126 = vmatprep.subr.mxu0 %v77_v26  ;;  %337 = vmatpush3.msra.mxu1 %v198_v39  ;;  %v193_v57 = vld [vmem:[#allocation7 + $0x20] sm:$0xff]  ;;  %v63_v58 = vld [vmem:[#allocation2 + $0x8] sm:$0xff]  ;;  %v207_v61 = vld [vmem:[#allocation7 + $0x90] sm:$0xff] }
  0x3c   :  { %127 = vmatpush1.msra.mxu0 %v76_v28  ;;  %338 = vmatprep.subr.mxu1 %v213_v41  ;;  %v208_v59 = vld [vmem:[#allocation7 + $0x98] sm:$0xff]  ;;  %v191_v62 = vld [vmem:[#allocation7 + $0x10] sm:$0xff]  ;;  %v206_v63 = vld [vmem:[#allocation7 + $0x88] sm:$0xff] }
  0x3d   :  { %128 = vmatprep.subr.mxu0 %v75_v30  ;;  %339 = vmatpush3.msra.mxu1 %v197_v43  ;;  %v192_v60 = vld [vmem:[#allocation7 + $0x18] sm:$0xff]  ;;  %v190_v1 = vld [vmem:[#allocation7 + $0x8] sm:$0xff]  ;;  %v205_v2 = vld [vmem:[#allocation7 + $0x80] sm:$0xff] }
  0x3e   :  { %129 = vmatpush1.msra.mxu0 %v74_v32  ;;  %340 = vmatprep.subr.mxu1 %v212_v45  ;;  %v189_v3 = vld [vmem:[#allocation7] sm:$0xff]  ;;  %v96_v6 = vld [vmem:[%s527_s2] sm:$0x3] }
  0x3f   :  { %130 = vmatprep.subr.mxu0 %v73_v34  ;;  %341 = vmatpush3.msra.mxu1 %v196_v47  ;;  %v323_v23 = vld [vmem:[%s529_s4] ss:$0 sm:$0xff] }
  0x40   :  { %131 = vmatpush1.msra.mxu0 %v72_v36  ;;  %342 = vmatprep.subr.mxu1 %v211_v49 }
  0x41   :  { %132 = vmatprep.subr.mxu0 %v71_v38  ;;  %343 = vmatpush3.msra.mxu1 %v195_v51 }
  0x42   :  { %133 = vmatpush1.msra.mxu0 %v70_v40  ;;  %344 = vmatprep.subr.mxu1 %v210_v53 }
  0x43   :  { %134 = vmatprep.subr.mxu0 %v69_v42  ;;  %345 = vmatpush3.msra.mxu1 %v194_v55 }
  0x44   :  { %135 = vmatpush1.msra.mxu0 %v68_v44  ;;  %346 = vmatprep.subr.mxu1 %v209_v56 }
  0x45   :  { %136 = vmatprep.subr.mxu0 %v67_v46  ;;  %347 = vmatpush3.msra.mxu1 %v193_v57 }
  0x46   :  { %137 = vmatpush1.msra.mxu0 %v66_v48  ;;  %348 = vmatprep.subr.mxu1 %v208_v59 }
  0x47   :  { %138 = vmatprep.subr.mxu0 %v65_v50  ;;  %349 = vmatpush3.msra.mxu1 %v192_v60 }
  0x48   :  { %139 = vmatpush1.msra.mxu0 %v64_v52  ;;  %350 = vmatprep.subr.mxu1 %v207_v61 }
  0x49   :  { %173 = vmatmul.mubr.f32.vlgmr.msra.gmra.mxu0 %v62_v54  ;;  %351 = vmatpush3.msra.mxu1 %v191_v62 }
  0x4a   :  { %178 = vmatprep.mubr.f32.mxu0 %v464_v0  ;;  %352 = vmatprep.subr.mxu1 %v206_v63  ;;  %v98_v0 = vlaneseq }
  0x4b   :  { %353 = vmatpush3.msra.mxu1 %v190_v1 }
  0x4c   :  { %354 = vmatprep.subr.mxu1 %v205_v2  ;;  %v99_v4 = vshrl.u32 %v98_v0, 7 }
  0x4d   :  { %179 = vmatmul.mubr.f32.gmra.mxu0 %v63_v58  ;;  %355 = vmatpush3.msra.mxu1 %v189_v3 }
  0x4e   :  { %v100_v5 = vsub.s32 0, %v99_v4  ;;  %v104_v7 = vsub.s32 1, %v99_v4 }
  0x50   :  { %v101_v8 = vrot.slane %v96_v6, %v100_v5  ;;  %v105_v9 = vrot.slane %v96_v6, %v104_v7 }
 0x109   :  { %v174_v10 = vpop.f32.mrf.mxu0 }
 0x10a   :  { %v175_v11 = vadd.f32 %v174_v10, %v101_v8 }
 0x10b   :  { %v176_v12 = vpop.f32.mrf.mxu0 }
 0x10c   :  { %v177_v13 = vadd.f32 %v176_v12, %v105_v9  ;;  %v185_v16 = vmax.f32 %v175_v11, 0.0 }
 0x10d   :  { %v180_v14 = vpop.f32.mrf.mxu0 }
 0x10e   :  { %v186_v15 = vmax.f32 %v177_v13, 0.0  ;;  %v181_v17 = vadd.f32 %v180_v14, %v101_v8 }
 0x10f   :  { %v182_v18 = vpop.f32.mrf.mxu0 }
 0x110   :  { %v183_v19 = vadd.f32 %v182_v18, %v105_v9  ;;  %292 = vmatprep.mubr.f32.mxu1 %v186_v15  ;;  %v187_v21 = vmax.f32 %v181_v17, 0.0 }
 0x111   :  { %293 = vmatmul.mubr.f32.vlgmr.msra.gmra.mxu1 %v185_v16 }
 0x112   :  { %v188_v20 = vmax.f32 %v183_v19, 0.0 }
 0x114   :  { %297 = vmatprep.mubr.f32.mxu1 %v188_v20 }
 0x115   :  { %298 = vmatmul.mubr.f32.gmra.mxu1 %v187_v21 }
 0x1d1   :  { %v356_v22 = vpop.f32.mrf.mxu1 }
 0x1d3   :  { %v357_v24 = vpop.f32.mrf.mxu1 }
 0x1d4   :  { %v358_v25 = vadd.f32 %v357_v24, %v356_v22 }
 0x1d5   :  { %v359_v26 = vpop.f32.mrf.mxu1 }
 0x1d6   :  { %v295_v27 = vadd.f32 %v358_v25, %v323_v23 }
 0x1d7   :  { %v360_v28 = vpop.f32.mrf.mxu1 }
 0x1d8   :  { %303 = vst [vmem:[#allocation8] sm:$0xff] %v295_v27  ;;  %v361_v29 = vadd.f32 %v360_v28, %v359_v26 }
 0x1da   :  { %v300_v30 = vadd.f32 %v361_v29, %v323_v23 }
 0x1dc   :  { %304 = vst [vmem:[#allocation8 + $0x8] sm:$0xff] %v300_v30 }
 0x1dd   :  { %442 = shalt.err (!%p439_p5)
}
 0x1de   :  { %316 = dma.vmem_to_hbm [thread:$0]  %s311_s13, 256, %s530_s5, [#allocation4], %s461_s28, %s461_s28, %s462_s29  }
 0x1df   :  { %455 = dma.done.wait [#allocation4], 256  }
 0x1e0   :  { %456 = vsyncadd [#allocation4], 4294967040 }
 0x1e1   :  { %320 = vsyncpa [#allocation3], 1 }
 0x1e2   :  { %321 = vsyncpa [#allocation6], 1 }
 0x1e3   :  { %322 = vsyncpa [#allocation4], 1 }

</bundles_post_ra>
